<compile_context>
chip_gen: v5e
topology: v5e:2x2
jax: 0.10.0
libtpu: 0.0.40
codegen_flags: <defaults>
</compile_context>

<pallas_src>
import jax
import jax.numpy as jnp
from jax.experimental import pallas as pl
from jax.experimental.pallas import tpu as pltpu

INPUT_SIZE = 5
OUTPUT_SIZE = 2

_SUBLANE = 8  # batch rows sit on the sublane axis -> tile granularity


def _round_up(n, m):
    return ((n + m - 1) // m) * m


def _linear_kernel(x_ref, wt_ref, b_ref, o_ref):
    # x_ref : (TB, in_f)    VMEM  -- natural (batch, feature) layout
    # wt_ref: (in_f, out_f) VMEM  -- W^T, resident across the whole grid
    # b_ref : (1, out_f)    VMEM  -- bias row, broadcast over the batch tile
    # o_ref : (TB, out_f)   VMEM
    acc = jnp.dot(x_ref[...], wt_ref[...], preferred_element_type=jnp.float32)
    o_ref[...] = (acc + b_ref[...]).astype(o_ref.dtype)


def linear_forward(x, w, b, *, block_b=8192):
    """y = x @ w.T + b, matching nn.Linear(input_size, output_size).

    x: (B, in_f), w: (out_f, in_f), b: (out_f,)  ->  y: (B, out_f)
    """
    B, in_f = x.shape
    out_f, in_f_w = w.shape
    assert in_f == in_f_w
    assert b.shape == (out_f,)

    # Batch tile: multiple of the sublane width (8); clamp to the batch.
    tb = max(_SUBLANE, min(_round_up(block_b, _SUBLANE), _round_up(B, _SUBLANE)))
    # Keep at least 2 grid steps when the batch can be split, so the
    # "parallel" axis actually shards across v7x's two TensorCores and the
    # pipeline has DMAs to overlap.
    if pl.cdiv(B, tb) < 2 and B > _SUBLANE:
        tb = max(_SUBLANE, _round_up(pl.cdiv(B, 2), _SUBLANE))
    grid = (pl.cdiv(B, tb),)

    # VMEM budget: x and y tiles are lane-padded (5->128, 2->128) = 512 B per
    # batch row each; 2 pipeline buffers each, plus a little slack.  Stays far
    # below physical VMEM (64 MiB on v7x, 128 MiB on v5e/v6e) at default tb.
    tile_bytes = tb * 128 * 4
    vmem_limit = int(min(max(4 * tile_bytes + (2 << 20), 16 << 20), 48 << 20))

    wt = w.T                      # (in_f, out_f) -- 10 elements, negligible
    b2d = b.reshape(1, out_f)     # free reshape

    y = pl.pallas_call(
        _linear_kernel,
        out_shape=jax.ShapeDtypeStruct((B, out_f), x.dtype),
        grid=grid,
        in_specs=[
            pl.BlockSpec((tb, in_f), lambda i: (i, 0)),      # x tile
            pl.BlockSpec((in_f, out_f), lambda i: (0, 0)),   # W^T (whole)
            pl.BlockSpec((1, out_f), lambda i: (0, 0)),      # bias row
        ],
        out_specs=pl.BlockSpec((tb, out_f), lambda i: (i, 0)),
        compiler_params=pltpu.CompilerParams(
            dimension_semantics=("parallel",),
            vmem_limit_bytes=vmem_limit,
        ),
    )(x, wt, b2d)

    return y


if __name__ == "__main__":
    key = jax.random.PRNGKey(0)
    k_x, k_w, k_b = jax.random.split(key, 3)

    batch = 256  # small; still exercises >= 2 grid steps (tb clamps to 128)
    x = jax.random.normal(k_x, (batch, INPUT_SIZE), dtype=jnp.float32)

    # Deterministic init mimicking nn.Linear's uniform(-1/sqrt(in), 1/sqrt(in))
    bound = 1.0 / (INPUT_SIZE ** 0.5)
    w = jax.random.uniform(
        k_w, (OUTPUT_SIZE, INPUT_SIZE), dtype=jnp.float32, minval=-bound, maxval=bound
    )
    b = jax.random.uniform(
        k_b, (OUTPUT_SIZE,), dtype=jnp.float32, minval=-bound, maxval=bound
    )

    y = jax.block_until_ready(linear_forward(x, w, b))

    # Reference check against plain JAX.
    y_ref = x @ w.T + b
    assert y.shape == (batch, OUTPUT_SIZE)
    assert jnp.allclose(y, y_ref, atol=1e-5, rtol=1e-5)

    # (The PyTorch module prints sizes inside forward; mirrored host-side.)
    print("  In Model: input size", x.shape, "output size", y.shape)
    print("KERNEL_OK")
</pallas_src>

<mosaic_0001>
module attributes {stable_mosaic.version = 11 : i64} {
  func.func @_linear_kernel(%arg0: i32, %arg1: memref<128x5xf32, #tpu.memory_space<vmem>>, %arg2: memref<5x2xf32, #tpu.memory_space<vmem>>, %arg3: memref<1x2xf32, #tpu.memory_space<vmem>>, %arg4: memref<128x2xf32, #tpu.memory_space<vmem>>) attributes {dimension_semantics = [#tpu.dimension_semantics<parallel>], iteration_bounds = array<i64: 2>, scalar_prefetch = 0 : i64, scratch_operands = 0 : i64, tpu.core_type = #tpu.core_type<tc>, window_params = [{transform_indices = @transform_0, window_bounds = array<i64: 128, 5>}, {pipeline_mode = #tpu.pipeline_mode<synchronous>, transform_indices = @transform_1, window_bounds = array<i64: 5, 2>}, {pipeline_mode = #tpu.pipeline_mode<synchronous>, transform_indices = @transform_2, window_bounds = array<i64: 1, 2>}, {transform_indices = @transform_3, window_bounds = array<i64: 128, 2>}]} {
    %c0 = arith.constant 0 : index
    %c0_0 = arith.constant 0 : index
    %0 = vector.load %arg1[%c0, %c0_0] : memref<128x5xf32, #tpu.memory_space<vmem>>, vector<128x5xf32>
    %c0_1 = arith.constant 0 : index
    %c0_2 = arith.constant 0 : index
    %1 = vector.load %arg2[%c0_1, %c0_2] : memref<5x2xf32, #tpu.memory_space<vmem>>, vector<5x2xf32>
    %cst = arith.constant dense<0.000000e+00> : vector<128x2xf32>
    %2 = tpu.matmul %0, %1, %cst {dimension_numbers = #tpu.dot_dimension_numbers<[1], [0], [0], [1], [0, 0, 1, 1], [], []>} : vector<128x5xf32>, vector<5x2xf32>, vector<128x2xf32> -> vector<128x2xf32>
    %c0_3 = arith.constant 0 : index
    %c0_4 = arith.constant 0 : index
    %3 = vector.load %arg3[%c0_3, %c0_4] : memref<1x2xf32, #tpu.memory_space<vmem>>, vector<1x2xf32>
    %4 = vector.broadcast %3 : vector<1x2xf32> to vector<128x2xf32>
    %5 = arith.addf %2, %4 : vector<128x2xf32>
    %c0_5 = arith.constant 0 : index
    %c0_6 = arith.constant 0 : index
    %6 = vector.load %arg4[%c0_5, %c0_6] : memref<128x2xf32, #tpu.memory_space<vmem>>, vector<128x2xf32>
    tpu.vector_store %arg4[%c0_5, %c0_6], %5 {strides = array<i32>} : memref<128x2xf32, #tpu.memory_space<vmem>>, vector<128x2xf32>,
    return
  }
  func.func @transform_0(%arg0: i32) -> (i32, i32) {
    %c0_i32 = arith.constant 0 : i32
    %c0_i32_0 = arith.constant 0 : i32
    return %arg0, %c0_i32 : i32, i32
  }
  func.func @transform_1(%arg0: i32) -> (i32, i32) {
    %c0_i32 = arith.constant 0 : i32
    %c0_i32_0 = arith.constant 0 : i32
    %c0_i32_1 = arith.constant 0 : i32
    return %c0_i32, %c0_i32_0 : i32, i32
  }
  func.func @transform_2(%arg0: i32) -> (i32, i32) {
    %c0_i32 = arith.constant 0 : i32
    %c0_i32_0 = arith.constant 0 : i32
    %c0_i32_1 = arith.constant 0 : i32
    return %c0_i32, %c0_i32_0 : i32, i32
  }
  func.func @transform_3(%arg0: i32) -> (i32, i32) {
    %c0_i32 = arith.constant 0 : i32
    %c0_i32_0 = arith.constant 0 : i32
    return %arg0, %c0_i32 : i32, i32
  }
}

</mosaic_0001>

<bundles_post_ra>
// kernel: tpu_custom_call.1
= control target key start
LH: loop header
LB: loop body
LE: loop exit
PB: predicated region body
PF: predicated region fallthrough
CT: control target
= control target key end

     0   :  { %s454_s12 = smov 0   ;;  %s534_s0 = inlined_call_operand.vmem [shape: f32[256,5], index: 0, kind: input, shape index: {}]   ;;  %s535_s1 = inlined_call_operand.vmem [shape: f32[5,2], index: 1, kind: input, shape index: {}]   ;;  %s536_s2 = inlined_call_operand.vmem [shape: f32[1,2], index: 2, kind: input, shape index: {}]   ;;  %s537_s3 = inlined_call_operand.vmem [shape: f32[256,2], index: 3, kind: output, shape index: {}]  }
   0x1 LB: > { %s386_s13 = sadd.s32 4294967295, %s432_s12   ;;  %p390_p0 = scmp.ge.s32.totalorder %s432_s12, 1  ;;  %s432_s12 = sphi %s454_s12, %s13_s12  }
   0x2   : > { %p138_p1 = scmp.lt.s32.totalorder %s432_s12, 3 }
   0x4   : > { %p139_p2 = pnand %p390_p0, %p138_p1 }
   0x5   : > { %s391_s16 = sshll.u32 (!%p139_p2), %s386_s13, 4 }
   0x6   : > { %142 = sbr.rel (%p139_p2) target bundleno = 175 (0xaf), region = 32  ;;  %p163_p3 = scmp.lt.s32.totalorder (!%p139_p2), %s391_s16, 31 }
   0xb   : > { %v190_v0 = vld [vmem:[%s535_s1] sm:$0x1f]  ;;  %vm244_vm0 = vcmask 1044480   ;;  %s539_s16 = smov (!%p163_p3, %s391_s16), 31  ;;  %vm195_vm1 = vcmask 39936   ;;  %vm313_vm2 = vcmask 15360  }
   0xc   : > { %415 = vmatpush.msk.msra.mxu2 %vm244_vm0, %v190_v0  ;;  %416 = vmatpush.msk.msra.mxu3 %vm244_vm0, %v190_v0  ;;  %s392_s17 = sshll.u32 %s539_s16, 3  ;;  %v425_v17 = vld [vmem:[%s536_s2] ss:$0 sm:$0xff] }
   0xd   : > { %395 = vmatpush.msk.msra.mxu0 %vm244_vm0, %v190_v0  ;;  %414 = vmatpush.msk.msra.mxu1 %vm244_vm0, %v190_v0  ;;  %s166_s20 = scalar_lea.vmem %s534_s0, %s392_s17  ;;  %s497_s25 = scalar_lea.vmem %s537_s3, %s392_s17 }
   0xe   : > { %v182_v1 = vld [vmem:[%s166_s20 + $0x40] sm:$0xff]  ;;  %v183_v5 = vld [vmem:[%s166_s20 + $0x48] sm:$0xff]  ;;  %v184_v9 = vld [vmem:[%s166_s20 + $0x50] sm:$0xff] }
   0xf   : > { %v186_v2 = vld [vmem:[%s166_s20 + $0x60] sm:$0xff]  ;;  %404 = vmatmul.msk.f32.vlgmr.msra.gmra.mxu2 %vm195_vm1, %v182_v1  ;;  %v187_v6 = vld [vmem:[%s166_s20 + $0x68] sm:$0xff]  ;;  %v188_v10 = vld [vmem:[%s166_s20 + $0x70] sm:$0xff] }
  0x10   : > { %v174_v3 = vld [vmem:[%s166_s20] sm:$0xff]  ;;  %408 = vmatmul.msk.f32.vlgmr.msra.gmra.mxu3 %vm195_vm1, %v186_v2  ;;  %v175_v7 = vld [vmem:[%s166_s20 + $0x8] sm:$0xff]  ;;  %v176_v11 = vld [vmem:[%s166_s20 + $0x10] sm:$0xff] }
  0x11   : > { %v178_v4 = vld [vmem:[%s166_s20 + $0x20] sm:$0xff]  ;;  %396 = vmatmul.msk.f32.vlgmr.msra.gmra.mxu0 %vm195_vm1, %v174_v3  ;;  %v179_v8 = vld [vmem:[%s166_s20 + $0x28] sm:$0xff]  ;;  %v180_v12 = vld [vmem:[%s166_s20 + $0x30] sm:$0xff] }
  0x12   : > { %400 = vmatmul.msk.f32.vlgmr.msra.gmra.mxu1 %vm195_vm1, %v178_v4  ;;  %v185_v13 = vld [vmem:[%s166_s20 + $0x58] sm:$0xff] }
  0x13   : > { %v189_v14 = vld [vmem:[%s166_s20 + $0x78] sm:$0xff] }
  0x14   : > { %v177_v15 = vld [vmem:[%s166_s20 + $0x18] sm:$0xff] }
  0x15   : > { %v181_v16 = vld [vmem:[%s166_s20 + $0x38] sm:$0xff] }
  0x17   : > { %405 = vmatmul.msk.f32.gmra.mxu2 %vm195_vm1, %v183_v5 }
  0x18   : > { %409 = vmatmul.msk.f32.gmra.mxu3 %vm195_vm1, %v187_v6 }
  0x19   : > { %397 = vmatmul.msk.f32.gmra.mxu0 %vm195_vm1, %v175_v7 }
  0x1a   : > { %401 = vmatmul.msk.f32.gmra.mxu1 %vm195_vm1, %v179_v8 }
  0x1f   : > { %406 = vmatmul.msk.f32.gmra.mxu2 %vm195_vm1, %v184_v9 }
  0x20   : > { %410 = vmatmul.msk.f32.gmra.mxu3 %vm195_vm1, %v188_v10 }
  0x21   : > { %398 = vmatmul.msk.f32.gmra.mxu0 %vm195_vm1, %v176_v11 }
  0x22   : > { %402 = vmatmul.msk.f32.gmra.mxu1 %vm195_vm1, %v180_v12 }
  0x27   : > { %407 = vmatmul.msk.f32.gmra.mxu2 %vm195_vm1, %v185_v13 }
  0x28   : > { %411 = vmatmul.msk.f32.gmra.mxu3 %vm195_vm1, %v189_v14 }
  0x29   : > { %399 = vmatmul.msk.f32.gmra.mxu0 %vm195_vm1, %v177_v15 }
  0x2a   : > { %403 = vmatmul.msk.f32.gmra.mxu1 %vm195_vm1, %v181_v16 }
  0x8e   : > { %v265_v18 = vpop.f32.mrf.mxu0 }
  0x8f   : > { %v277_v19 = vpop.f32.mrf.mxu1  ;;  %v266_v20 = vadd.f32 %v425_v17, %v265_v18 }
  0x90   : > { %v278_v21 = vadd.f32 %v425_v17, %v277_v19 }
  0x91   : > { %314 = vst.msk [vmem:[%s497_s25] sm:$0xff] %vm313_vm2, %v266_v20 }
  0x92   : > { %318 = vst.msk [vmem:[%s497_s25 + $0x20] sm:$0xff] %vm313_vm2, %v278_v21  ;;  %v289_v22 = vpop.f32.mrf.mxu2 }
  0x93   : > { %v301_v23 = vpop.f32.mrf.mxu3  ;;  %v290_v24 = vadd.f32 %v425_v17, %v289_v22 }
  0x94   : > { %v302_v25 = vadd.f32 %v425_v17, %v301_v23 }
  0x95   : > { %322 = vst.msk [vmem:[%s497_s25 + $0x40] sm:$0xff] %vm313_vm2, %v290_v24 }
  0x96   : > { %v268_v26 = vpop.f32.mrf.mxu0  ;;  %326 = vst.msk [vmem:[%s497_s25 + $0x60] sm:$0xff] %vm313_vm2, %v302_v25 }
  0x97   : > { %v280_v27 = vpop.f32.mrf.mxu1  ;;  %v269_v28 = vadd.f32 %v425_v17, %v268_v26 }
  0x98   : > { %v281_v29 = vadd.f32 %v425_v17, %v280_v27 }
  0x99   : > { %315 = vst.msk [vmem:[%s497_s25 + $0x8] sm:$0xff] %vm313_vm2, %v269_v28 }
  0x9a   : > { %319 = vst.msk [vmem:[%s497_s25 + $0x28] sm:$0xff] %vm313_vm2, %v281_v29  ;;  %v292_v30 = vpop.f32.mrf.mxu2 }
  0x9b   : > { %v304_v31 = vpop.f32.mrf.mxu3  ;;  %v293_v32 = vadd.f32 %v425_v17, %v292_v30 }
  0x9c   : > { %v305_v33 = vadd.f32 %v425_v17, %v304_v31 }
  0x9d   : > { %323 = vst.msk [vmem:[%s497_s25 + $0x48] sm:$0xff] %vm313_vm2, %v293_v32 }
  0x9e   : > { %v271_v34 = vpop.f32.mrf.mxu0  ;;  %327 = vst.msk [vmem:[%s497_s25 + $0x68] sm:$0xff] %vm313_vm2, %v305_v33 }
  0x9f   : > { %v283_v35 = vpop.f32.mrf.mxu1  ;;  %v272_v36 = vadd.f32 %v425_v17, %v271_v34 }
  0xa0   : > { %v284_v37 = vadd.f32 %v425_v17, %v283_v35 }
  0xa1   : > { %316 = vst.msk [vmem:[%s497_s25 + $0x10] sm:$0xff] %vm313_vm2, %v272_v36 }
  0xa2   : > { %320 = vst.msk [vmem:[%s497_s25 + $0x30] sm:$0xff] %vm313_vm2, %v284_v37  ;;  %v295_v38 = vpop.f32.mrf.mxu2 }
  0xa3   : > { %v307_v39 = vpop.f32.mrf.mxu3  ;;  %v296_v40 = vadd.f32 %v425_v17, %v295_v38 }
  0xa4   : > { %v308_v41 = vadd.f32 %v425_v17, %v307_v39 }
  0xa5   : > { %324 = vst.msk [vmem:[%s497_s25 + $0x50] sm:$0xff] %vm313_vm2, %v296_v40 }
  0xa6   : > { %v274_v42 = vpop.f32.mrf.mxu0  ;;  %328 = vst.msk [vmem:[%s497_s25 + $0x70] sm:$0xff] %vm313_vm2, %v308_v41 }
  0xa7   : > { %v286_v43 = vpop.f32.mrf.mxu1  ;;  %v275_v44 = vadd.f32 %v425_v17, %v274_v42 }
  0xa8   : > { %v287_v45 = vadd.f32 %v425_v17, %v286_v43 }
  0xa9   : > { %317 = vst.msk [vmem:[%s497_s25 + $0x18] sm:$0xff] %vm313_vm2, %v275_v44 }
  0xaa   : > { %321 = vst.msk [vmem:[%s497_s25 + $0x38] sm:$0xff] %vm313_vm2, %v287_v45  ;;  %v298_v46 = vpop.f32.mrf.mxu2 }
  0xab   : > { %v310_v47 = vpop.f32.mrf.mxu3  ;;  %v299_v48 = vadd.f32 %v425_v17, %v298_v46 }
  0xac   : > { %v311_v49 = vadd.f32 %v425_v17, %v310_v47 }
  0xad   : > { %325 = vst.msk [vmem:[%s497_s25 + $0x58] sm:$0xff] %vm313_vm2, %v299_v48 }
  0xae   : > { %329 = vst.msk [vmem:[%s497_s25 + $0x78] sm:$0xff] %vm313_vm2, %v311_v49 }
  0xaf PF: > { %s13_s12 = sadd.s32 1, %s432_s12  }
  0xb0   : > { %p10_p4 = scmp.ge.s32.totalorder %s13_s12, 4  }
  0xb2   :  { %12 = sbr.rel (!%p10_p4) target bundleno = 1 (0x1), region = 62 }

</bundles_post_ra>
